<compile_context>
chip_gen: v6e
topology: v6e:2x2x1
jax: 0.10.0
libtpu: 0.0.40
codegen_flags: <defaults>
</compile_context>

<pallas_src>
import jax
import jax.numpy as jnp
from jax.experimental import pallas as pl
from jax.experimental.pallas import tpu as pltpu

INPUT_SIZE = 1
HIDDEN = 32          # small hidden size -> 4*H = 128 (one lane-width of gates)
OUTPUT_SIZE = 1
SEQ = 8


def lstm_kernel(x_ref, wih_ref, whh_ref, b_ref, wlin_ref, blin_ref, out_ref):
    """Full LSTM recurrence + final linear head in one kernel invocation.

    x_ref:    (S, INPUT_SIZE)       f32
    wih_ref:  (INPUT_SIZE, 4H)      f32   (W_ih^T)
    whh_ref:  (H, 4H)               f32   (W_hh^T)
    b_ref:    (1, 4H)               f32   (b_ih + b_hh)
    wlin_ref: (OUTPUT_SIZE, H)      f32   (W_lin, as-is: (1, H))
    blin_ref: (1, OUTPUT_SIZE)      f32
    out_ref:  (1, OUTPUT_SIZE)      f32   (= predictions[-1])
    """
    H = HIDDEN

    # Hoist weight loads out of the unrolled recurrence (Mosaic does not CSE
    # ref loads across loop iterations). W_hh is only 4 vregs.
    whh = whh_ref[...]            # (H, 4H)
    wlin = wlin_ref[...]          # (1, H)
    blin = blin_ref[...]          # (1, OUTPUT_SIZE)

    # Input projection for all timesteps at once. INPUT_SIZE == 1, so this is
    # a rank-1 outer product -> VPU broadcast multiply, not an MXU matmul.
    # Gate layout is i|f|g|o along the 4H lane axis (torch order).
    xg = x_ref[...] * wih_ref[...] + b_ref[...]   # (S, 4H)

    h = jnp.zeros((1, H), jnp.float32)
    c = jnp.zeros((1, H), jnp.float32)

    # Static unroll of the recurrence (S is a compile-time constant, live
    # state is tiny). Slices into xg are static sublane slices.
    for t in range(SEQ):
        gates = xg[t:t + 1, :] + jnp.dot(
            h, whh, preferred_element_type=jnp.float32)       # (1, 4H)
        # Full-vreg EUP ops: one sigmoid and one tanh over all 128 gate lanes,
        # then slice per-gate (the wasted tanh/sigmoid lanes ride for free).
        sg = jax.nn.sigmoid(gates)
        tg = jnp.tanh(gates)
        i = sg[:, 0:H]
        f = sg[:, H:2 * H]
        g = tg[:, 2 * H:3 * H]
        o = sg[:, 3 * H:4 * H]
        c = f * c + i * g
        h = o * jnp.tanh(c)

    # Final linear head (OUTPUT_SIZE == 1): multiply + lane reduce instead of
    # a degenerate (1,32)@(32,1) MXU matmul.
    out_ref[...] = jnp.sum(h * wlin, axis=-1, keepdims=True) + blin


def lstm_forward_pallas(x, w_ih, w_hh, b_ih, b_hh, w_lin, b_lin):
    """x: (S,) time series. Returns (OUTPUT_SIZE,) = predictions[-1]."""
    S = x.shape[0]
    x2 = x.reshape(S, INPUT_SIZE).astype(jnp.float32)
    wih_t = w_ih.T                                  # (INPUT_SIZE, 4H)
    whh_t = w_hh.T                                  # (H, 4H)
    b = (b_ih + b_hh).reshape(1, 4 * HIDDEN)        # (1, 4H)
    wlin = w_lin.reshape(OUTPUT_SIZE, HIDDEN)       # (1, H) -- used row-wise
    blin = b_lin.reshape(1, OUTPUT_SIZE)

    vmem = pl.BlockSpec(memory_space=pltpu.MemorySpace.VMEM)
    out = pl.pallas_call(
        lstm_kernel,
        out_shape=jax.ShapeDtypeStruct((1, OUTPUT_SIZE), jnp.float32),
        in_specs=[vmem] * 6,
        out_specs=vmem,
    )(x2, wih_t, whh_t, b, wlin, blin)
    return out[0]


def lstm_forward_ref(x, w_ih, w_hh, b_ih, b_hh, w_lin, b_lin):
    """Pure-JAX reference matching torch.nn.LSTM semantics (batch=1)."""
    S = x.shape[0]
    H = HIDDEN
    x2 = x.reshape(S, INPUT_SIZE).astype(jnp.float32)
    h = jnp.zeros((1, H), jnp.float32)
    c = jnp.zeros((1, H), jnp.float32)
    for t in range(S):
        gates = x2[t:t + 1] @ w_ih.T + b_ih + h @ w_hh.T + b_hh
        i = jax.nn.sigmoid(gates[:, 0:H])
        f = jax.nn.sigmoid(gates[:, H:2 * H])
        g = jnp.tanh(gates[:, 2 * H:3 * H])
        o = jax.nn.sigmoid(gates[:, 3 * H:4 * H])
        c = f * c + i * g
        h = o * jnp.tanh(c)
    pred = h @ w_lin.T + b_lin
    return pred[0]


if __name__ == "__main__":
    key = jax.random.PRNGKey(0)
    keys = jax.random.split(key, 8)
    k = 1.0 / jnp.sqrt(HIDDEN)

    # Deterministic synthetic parameters (same shapes as torch.nn.LSTM / Linear).
    w_ih = jax.random.uniform(keys[0], (4 * HIDDEN, INPUT_SIZE), jnp.float32, -k, k)
    w_hh = jax.random.uniform(keys[1], (4 * HIDDEN, HIDDEN), jnp.float32, -k, k)
    b_ih = jax.random.uniform(keys[2], (4 * HIDDEN,), jnp.float32, -k, k)
    b_hh = jax.random.uniform(keys[3], (4 * HIDDEN,), jnp.float32, -k, k)
    w_lin = jax.random.uniform(keys[4], (OUTPUT_SIZE, HIDDEN), jnp.float32, -k, k)
    b_lin = jax.random.uniform(keys[5], (OUTPUT_SIZE,), jnp.float32, -k, k)

    # Input: 1-D time series of length SEQ (as in module.forward(input_seq)).
    x = jax.random.normal(keys[6], (SEQ,), jnp.float32)

    out = lstm_forward_pallas(x, w_ih, w_hh, b_ih, b_hh, w_lin, b_lin)
    out = jax.block_until_ready(out)

    ref = lstm_forward_ref(x, w_ih, w_hh, b_ih, b_hh, w_lin, b_lin)
    assert out.shape == (OUTPUT_SIZE,)
    assert jnp.allclose(out, ref, atol=1e-5, rtol=1e-5), (out, ref)

    print("KERNEL_OK")
</pallas_src>

<mosaic_0001>
module attributes {stable_mosaic.version = 11 : i64} {
  func.func @lstm_kernel(%arg0: memref<8x1xf32, #tpu.memory_space<vmem>>, %arg1: memref<1x128xf32, #tpu.memory_space<vmem>>, %arg2: memref<32x128xf32, #tpu.memory_space<vmem>>, %arg3: memref<1x128xf32, #tpu.memory_space<vmem>>, %arg4: memref<1x32xf32, #tpu.memory_space<vmem>>, %arg5: memref<1x1xf32, #tpu.memory_space<vmem>>, %arg6: memref<1x1xf32, #tpu.memory_space<vmem>>) attributes {dimension_semantics = [], scalar_prefetch = 0 : i64, scratch_operands = 0 : i64, tpu.core_type = #tpu.core_type<tc>} {
    %c0 = arith.constant 0 : index
    %c0_0 = arith.constant 0 : index
    %0 = vector.load %arg2[%c0, %c0_0] : memref<32x128xf32, #tpu.memory_space<vmem>>, vector<32x128xf32>
    %c0_1 = arith.constant 0 : index
    %c0_2 = arith.constant 0 : index
    %1 = vector.load %arg4[%c0_1, %c0_2] : memref<1x32xf32, #tpu.memory_space<vmem>>, vector<1x32xf32>
    %c0_3 = arith.constant 0 : index
    %c0_4 = arith.constant 0 : index
    %2 = vector.load %arg5[%c0_3, %c0_4] : memref<1x1xf32, #tpu.memory_space<vmem>>, vector<1x1xf32>
    %c0_5 = arith.constant 0 : index
    %c0_6 = arith.constant 0 : index
    %3 = vector.load %arg0[%c0_5, %c0_6] : memref<8x1xf32, #tpu.memory_space<vmem>>, vector<8x1xf32>
    %c0_7 = arith.constant 0 : index
    %c0_8 = arith.constant 0 : index
    %4 = vector.load %arg1[%c0_7, %c0_8] : memref<1x128xf32, #tpu.memory_space<vmem>>, vector<1x128xf32>
    %5 = vector.broadcast %3 : vector<8x1xf32> to vector<8x128xf32>
    %6 = vector.broadcast %4 : vector<1x128xf32> to vector<8x128xf32>
    %7 = arith.mulf %5, %6 : vector<8x128xf32>
    %c0_9 = arith.constant 0 : index
    %c0_10 = arith.constant 0 : index
    %8 = vector.load %arg3[%c0_9, %c0_10] : memref<1x128xf32, #tpu.memory_space<vmem>>, vector<1x128xf32>
    %9 = vector.broadcast %8 : vector<1x128xf32> to vector<8x128xf32>
    %10 = arith.addf %7, %9 : vector<8x128xf32>
    %cst = arith.constant 0.000000e+00 : f32
    %11 = vector.broadcast %cst : f32 to vector<1x32xf32>
    %cst_11 = arith.constant 0.000000e+00 : f32
    %12 = vector.broadcast %cst_11 : f32 to vector<1x32xf32>
    %13 = vector.extract_strided_slice %10 {offsets = [0, 0], sizes = [1, 128], strides = [1, 1]} : vector<8x128xf32> to vector<1x128xf32>
    %cst_12 = arith.constant dense<0.000000e+00> : vector<1x128xf32>
    %14 = tpu.matmul %11, %0, %cst_12 {dimension_numbers = #tpu.dot_dimension_numbers<[1], [0], [0], [1], [0, 0, 1, 1], [], []>} : vector<1x32xf32>, vector<32x128xf32>, vector<1x128xf32> -> vector<1x128xf32>
    %15 = arith.addf %13, %14 : vector<1x128xf32>
    %16 = arith.negf %15 : vector<1x128xf32>
    %17 = math.exp %16 : vector<1x128xf32>
    %cst_13 = arith.constant 1.000000e+00 : f32
    %18 = vector.broadcast %cst_13 : f32 to vector<1x128xf32>
    %19 = arith.addf %18, %17 : vector<1x128xf32>
    %20 = arith.divf %18, %19 : vector<1x128xf32>
    %21 = math.tanh %15 : vector<1x128xf32>
    %22 = vector.extract_strided_slice %20 {offsets = [0, 0], sizes = [1, 32], strides = [1, 1]} : vector<1x128xf32> to vector<1x32xf32>
    %23 = vector.extract_strided_slice %20 {offsets = [0, 32], sizes = [1, 32], strides = [1, 1]} : vector<1x128xf32> to vector<1x32xf32>
    %24 = vector.extract_strided_slice %21 {offsets = [0, 64], sizes = [1, 32], strides = [1, 1]} : vector<1x128xf32> to vector<1x32xf32>
    %25 = vector.extract_strided_slice %20 {offsets = [0, 96], sizes = [1, 32], strides = [1, 1]} : vector<1x128xf32> to vector<1x32xf32>
    %26 = arith.mulf %23, %12 : vector<1x32xf32>
    %27 = arith.mulf %22, %24 : vector<1x32xf32>
    %28 = arith.addf %26, %27 : vector<1x32xf32>
    %29 = math.tanh %28 : vector<1x32xf32>
    %30 = arith.mulf %25, %29 : vector<1x32xf32>
    %31 = vector.extract_strided_slice %10 {offsets = [1, 0], sizes = [1, 128], strides = [1, 1]} : vector<8x128xf32> to vector<1x128xf32>
    %cst_14 = arith.constant dense<0.000000e+00> : vector<1x128xf32>
    %32 = tpu.matmul %30, %0, %cst_14 {dimension_numbers = #tpu.dot_dimension_numbers<[1], [0], [0], [1], [0, 0, 1, 1], [], []>} : vector<1x32xf32>, vector<32x128xf32>, vector<1x128xf32> -> vector<1x128xf32>
    %33 = arith.addf %31, %32 : vector<1x128xf32>
    %34 = arith.negf %33 : vector<1x128xf32>
    %35 = math.exp %34 : vector<1x128xf32>
    %cst_15 = arith.constant 1.000000e+00 : f32
    %36 = vector.broadcast %cst_15 : f32 to vector<1x128xf32>
    %37 = arith.addf %36, %35 : vector<1x128xf32>
    %38 = arith.divf %36, %37 : vector<1x128xf32>
    %39 = math.tanh %33 : vector<1x128xf32>
    %40 = vector.extract_strided_slice %38 {offsets = [0, 0], sizes = [1, 32], strides = [1, 1]} : vector<1x128xf32> to vector<1x32xf32>
    %41 = vector.extract_strided_slice %38 {offsets = [0, 32], sizes = [1, 32], strides = [1, 1]} : vector<1x128xf32> to vector<1x32xf32>
    %42 = vector.extract_strided_slice %39 {offsets = [0, 64], sizes = [1, 32], strides = [1, 1]} : vector<1x128xf32> to vector<1x32xf32>
    %43 = vector.extract_strided_slice %38 {offsets = [0, 96], sizes = [1, 32], strides = [1, 1]} : vector<1x128xf32> to vector<1x32xf32>
    %44 = arith.mulf %41, %28 : vector<1x32xf32>
    %45 = arith.mulf %40, %42 : vector<1x32xf32>
    %46 = arith.addf %44, %45 : vector<1x32xf32>
    %47 = math.tanh %46 : vector<1x32xf32>
    %48 = arith.mulf %43, %47 : vector<1x32xf32>
    %49 = vector.extract_strided_slice %10 {offsets = [2, 0], sizes = [1, 128], strides = [1, 1]} : vector<8x128xf32> to vector<1x128xf32>
    %cst_16 = arith.constant dense<0.000000e+00> : vector<1x128xf32>
    %50 = tpu.matmul %48, %0, %cst_16 {dimension_numbers = #tpu.dot_dimension_numbers<[1], [0], [0], [1], [0, 0, 1, 1], [], []>} : vector<1x32xf32>, vector<32x128xf32>, vector<1x128xf32> -> vector<1x128xf32>
    %51 = arith.addf %49, %50 : vector<1x128xf32>
    %52 = arith.negf %51 : vector<1x128xf32>
    %53 = math.exp %52 : vector<1x128xf32>
    %cst_17 = arith.constant 1.000000e+00 : f32
    %54 = vector.broadcast %cst_17 : f32 to vector<1x128xf32>
    %55 = arith.addf %54, %53 : vector<1x128xf32>
    %56 = arith.divf %54, %55 : vector<1x128xf32>
    %57 = math.tanh %51 : vector<1x128xf32>
    %58 = vector.extract_strided_slice %56 {offsets = [0, 0], sizes = [1, 32], strides = [1, 1]} : vector<1x128xf32> to vector<1x32xf32>
    %59 = vector.extract_strided_slice %56 {offsets = [0, 32], sizes = [1, 32], strides = [1, 1]} : vector<1x128xf32> to vector<1x32xf32>
    %60 = vector.extract_strided_slice %57 {offsets = [0, 64], sizes = [1, 32], strides = [1, 1]} : vector<1x128xf32> to vector<1x32xf32>
    %61 = vector.extract_strided_slice %56 {offsets = [0, 96], sizes = [1, 32], strides = [1, 1]} : vector<1x128xf32> to vector<1x32xf32>
    %62 = arith.mulf %59, %46 : vector<1x32xf32>
    %63 = arith.mulf %58, %60 : vector<1x32xf32>
    %64 = arith.addf %62, %63 : vector<1x32xf32>
    %65 = math.tanh %64 : vector<1x32xf32>
    %66 = arith.mulf %61, %65 : vector<1x32xf32>
    %67 = vector.extract_strided_slice %10 {offsets = [3, 0], sizes = [1, 128], strides = [1, 1]} : vector<8x128xf32> to vector<1x128xf32>
    %cst_18 = arith.constant dense<0.000000e+00> : vector<1x128xf32>
    %68 = tpu.matmul %66, %0, %cst_18 {dimension_numbers = #tpu.dot_dimension_numbers<[1], [0], [0], [1], [0, 0, 1, 1], [], []>} : vector<1x32xf32>, vector<32x128xf32>, vector<1x128xf32> -> vector<1x128xf32>
    %69 = arith.addf %67, %68 : vector<1x128xf32>
    %70 = arith.negf %69 : vector<1x128xf32>
    %71 = math.exp %70 : vector<1x128xf32>
    %cst_19 = arith.constant 1.000000e+00 : f32
    %72 = vector.broadcast %cst_19 : f32 to vector<1x128xf32>
    %73 = arith.addf %72, %71 : vector<1x128xf32>
    %74 = arith.divf %72, %73 : vector<1x128xf32>
    %75 = math.tanh %69 : vector<1x128xf32>
    %76 = vector.extract_strided_slice %74 {offsets = [0, 0], sizes = [1, 32], strides = [1, 1]} : vector<1x128xf32> to vector<1x32xf32>
    %77 = vector.extract_strided_slice %74 {offsets = [0, 32], sizes = [1, 32], strides = [1, 1]} : vector<1x128xf32> to vector<1x32xf32>
    %78 = vector.extract_strided_slice %75 {offsets = [0, 64], sizes = [1, 32], strides = [1, 1]} : vector<1x128xf32> to vector<1x32xf32>
    %79 = vector.extract_strided_slice %74 {offsets = [0, 96], sizes = [1, 32], strides = [1, 1]} : vector<1x128xf32> to vector<1x32xf32>
    %80 = arith.mulf %77, %64 : vector<1x32xf32>
    %81 = arith.mulf %76, %78 : vector<1x32xf32>
    %82 = arith.addf %80, %81 : vector<1x32xf32>
    %83 = math.tanh %82 : vector<1x32xf32>
    %84 = arith.mulf %79, %83 : vector<1x32xf32>
    %85 = vector.extract_strided_slice %10 {offsets = [4, 0], sizes = [1, 128], strides = [1, 1]} : vector<8x128xf32> to vector<1x128xf32>
    %cst_20 = arith.constant dense<0.000000e+00> : vector<1x128xf32>
    %86 = tpu.matmul %84, %0, %cst_20 {dimension_numbers = #tpu.dot_dimension_numbers<[1], [0], [0], [1], [0, 0, 1, 1], [], []>} : vector<1x32xf32>, vector<32x128xf32>, vector<1x128xf32> -> vector<1x128xf32>
    %87 = arith.addf %85, %86 : vector<1x128xf32>
    %88 = arith.negf %87 : vector<1x128xf32>
    %89 = math.exp %88 : vector<1x128xf32>
    %cst_21 = arith.constant 1.000000e+00 : f32
    %90 = vector.broadcast %cst_21 : f32 to vector<1x128xf32>
    %91 = arith.addf %90, %89 : vector<1x128xf32>
    %92 = arith.divf %90, %91 : vector<1x128xf32>
    %93 = math.tanh %87 : vector<1x128xf32>
    %94 = vector.extract_strided_slice %92 {offsets = [0, 0], sizes = [1, 32], strides = [1, 1]} : vector<1x128xf32> to vector<1x32xf32>
    %95 = vector.extract_strided_slice %92 {offsets = [0, 32], sizes = [1, 32], strides = [1, 1]} : vector<1x128xf32> to vector<1x32xf32>
    %96 = vector.extract_strided_slice %93 {offsets = [0, 64], sizes = [1, 32], strides = [1, 1]} : vector<1x128xf32> to vector<1x32xf32>
    %97 = vector.extract_strided_slice %92 {offsets = [0, 96], sizes = [1, 32], strides = [1, 1]} : vector<1x128xf32> to vector<1x32xf32>
    %98 = arith.mulf %95, %82 : vector<1x32xf32>
    %99 = arith.mulf %94, %96 : vector<1x32xf32>
    %100 = arith.addf %98, %99 : vector<1x32xf32>
    %101 = math.tanh %100 : vector<1x32xf32>
    %102 = arith.mulf %97, %101 : vector<1x32xf32>
    %103 = vector.extract_strided_slice %10 {offsets = [5, 0], sizes = [1, 128], strides = [1, 1]} : vector<8x128xf32> to vector<1x128xf32>
    %cst_22 = arith.constant dense<0.000000e+00> : vector<1x128xf32>
    %104 = tpu.matmul %102, %0, %cst_22 {dimension_numbers = #tpu.dot_dimension_numbers<[1], [0], [0], [1], [0, 0, 1, 1], [], []>} : vector<1x32xf32>, vector<32x128xf32>, vector<1x128xf32> -> vector<1x128xf32>
    %105 = arith.addf %103, %104 : vector<1x128xf32>
    %106 = arith.negf %105 : vector<1x128xf32>
    %107 = math.exp %106 : vector<1x128xf32>
    %cst_23 = arith.constant 1.000000e+00 : f32
    %108 = vector.broadcast %cst_23 : f32 to vector<1x128xf32>
    %109 = arith.addf %108, %107 : vector<1x128xf32>
    %110 = arith.divf %108, %109 : vector<1x128xf32>
    %111 = math.tanh %105 : vector<1x128xf32>
    %112 = vector.extract_strided_slice %110 {offsets = [0, 0], sizes = [1, 32], strides = [1, 1]} : vector<1x128xf32> to vector<1x32xf32>
    %113 = vector.extract_strided_slice %110 {offsets = [0, 32], sizes = [1, 32], strides = [1, 1]} : vector<1x128xf32> to vector<1x32xf32>
    %114 = vector.extract_strided_slice %111 {offsets = [0, 64], sizes = [1, 32], strides = [1, 1]} : vector<1x128xf32> to vector<1x32xf32>
    %115 = vector.extract_strided_slice %110 {offsets = [0, 96], sizes = [1, 32], strides = [1, 1]} : vector<1x128xf32> to vector<1x32xf32>
    %116 = arith.mulf %113, %100 : vector<1x32xf32>
    %117 = arith.mulf %112, %114 : vector<1x32xf32>
    %118 = arith.addf %116, %117 : vector<1x32xf32>
    %119 = math.tanh %118 : vector<1x32xf32>
    %120 = arith.mulf %115, %119 : vector<1x32xf32>
    %121 = vector.extract_strided_slice %10 {offsets = [6, 0], sizes = [1, 128], strides = [1, 1]} : vector<8x128xf32> to vector<1x128xf32>
    %cst_24 = arith.constant dense<0.000000e+00> : vector<1x128xf32>
    %122 = tpu.matmul %120, %0, %cst_24 {dimension_numbers = #tpu.dot_dimension_numbers<[1], [0], [0], [1], [0, 0, 1, 1], [], []>} : vector<1x32xf32>, vector<32x128xf32>, vector<1x128xf32> -> vector<1x128xf32>
    %123 = arith.addf %121, %122 : vector<1x128xf32>
    %124 = arith.negf %123 : vector<1x128xf32>
    %125 = math.exp %124 : vector<1x128xf32>
    %cst_25 = arith.constant 1.000000e+00 : f32
    %126 = vector.broadcast %cst_25 : f32 to vector<1x128xf32>
    %127 = arith.addf %126, %125 : vector<1x128xf32>
    %128 = arith.divf %126, %127 : vector<1x128xf32>
    %129 = math.tanh %123 : vector<1x128xf32>
    %130 = vector.extract_strided_slice %128 {offsets = [0, 0], sizes = [1, 32], strides = [1, 1]} : vector<1x128xf32> to vector<1x32xf32>
    %131 = vector.extract_strided_slice %128 {offsets = [0, 32], sizes = [1, 32], strides = [1, 1]} : vector<1x128xf32> to vector<1x32xf32>
    %132 = vector.extract_strided_slice %129 {offsets = [0, 64], sizes = [1, 32], strides = [1, 1]} : vector<1x128xf32> to vector<1x32xf32>
    %133 = vector.extract_strided_slice %128 {offsets = [0, 96], sizes = [1, 32], strides = [1, 1]} : vector<1x128xf32> to vector<1x32xf32>
    %134 = arith.mulf %131, %118 : vector<1x32xf32>
    %135 = arith.mulf %130, %132 : vector<1x32xf32>
    %136 = arith.addf %134, %135 : vector<1x32xf32>
    %137 = math.tanh %136 : vector<1x32xf32>
    %138 = arith.mulf %133, %137 : vector<1x32xf32>
    %139 = vector.extract_strided_slice %10 {offsets = [7, 0], sizes = [1, 128], strides = [1, 1]} : vector<8x128xf32> to vector<1x128xf32>
    %cst_26 = arith.constant dense<0.000000e+00> : vector<1x128xf32>
    %140 = tpu.matmul %138, %0, %cst_26 {dimension_numbers = #tpu.dot_dimension_numbers<[1], [0], [0], [1], [0, 0, 1, 1], [], []>} : vector<1x32xf32>, vector<32x128xf32>, vector<1x128xf32> -> vector<1x128xf32>
    %141 = arith.addf %139, %140 : vector<1x128xf32>
    %142 = arith.negf %141 : vector<1x128xf32>
    %143 = math.exp %142 : vector<1x128xf32>
    %cst_27 = arith.constant 1.000000e+00 : f32
    %144 = vector.broadcast %cst_27 : f32 to vector<1x128xf32>
    %145 = arith.addf %144, %143 : vector<1x128xf32>
    %146 = arith.divf %144, %145 : vector<1x128xf32>
    %147 = math.tanh %141 : vector<1x128xf32>
    %148 = vector.extract_strided_slice %146 {offsets = [0, 0], sizes = [1, 32], strides = [1, 1]} : vector<1x128xf32> to vector<1x32xf32>
    %149 = vector.extract_strided_slice %146 {offsets = [0, 32], sizes = [1, 32], strides = [1, 1]} : vector<1x128xf32> to vector<1x32xf32>
    %150 = vector.extract_strided_slice %147 {offsets = [0, 64], sizes = [1, 32], strides = [1, 1]} : vector<1x128xf32> to vector<1x32xf32>
    %151 = vector.extract_strided_slice %146 {offsets = [0, 96], sizes = [1, 32], strides = [1, 1]} : vector<1x128xf32> to vector<1x32xf32>
    %152 = arith.mulf %149, %136 : vector<1x32xf32>
    %153 = arith.mulf %148, %150 : vector<1x32xf32>
    %154 = arith.addf %152, %153 : vector<1x32xf32>
    %155 = math.tanh %154 : vector<1x32xf32>
    %156 = arith.mulf %151, %155 : vector<1x32xf32>
    %157 = arith.mulf %156, %1 : vector<1x32xf32>
    %cst_28 = arith.constant dense<0.000000e+00> : vector<1xf32>
    %158 = vector.multi_reduction <add>, %157, %cst_28 [1] : vector<1x32xf32> to vector<1xf32>
    %159 = vector.shape_cast %158 : vector<1xf32> to vector<1x1xf32>
    %160 = arith.addf %159, %2 : vector<1x1xf32>
    %c0_29 = arith.constant 0 : index
    %c0_30 = arith.constant 0 : index
    %161 = vector.load %arg6[%c0_29, %c0_30] : memref<1x1xf32, #tpu.memory_space<vmem>>, vector<1x1xf32>
    tpu.vector_store %arg6[%c0_29, %c0_30], %160 {strides = array<i32>} : memref<1x1xf32, #tpu.memory_space<vmem>>, vector<1x1xf32>,
    return
  }
}

</mosaic_0001>

<bundles_post_ra>
// kernel: tpu_custom_call.1
= control target key start
LH: loop header
LB: loop body
LE: loop exit
PB: predicated region body
PF: predicated region fallthrough
CT: control target
= control target key end

     0   :  { %s1426_s0 = inlined_call_operand.vmem [shape: f32[8,1], index: 0, kind: input, shape index: {}]   ;;  %s1427_s1 = inlined_call_operand.vmem [shape: f32[1,128], index: 1, kind: input, shape index: {}]   ;;  %s1428_s2 = inlined_call_operand.hbm [shape: f32[32,128], index: 2, kind: input, shape index: {}]   ;;  %s1429_s3 = inlined_call_operand.vmem [shape: f32[1,128], index: 3, kind: input, shape index: {}]   ;;  %s1430_s4 = inlined_call_operand.vmem [shape: f32[1,32], index: 4, kind: input, shape index: {}]   ;;  %s1431_s5 = inlined_call_operand.<no memory space> [shape: f32[1,1], index: 5, kind: input, shape index: {}]   ;;  %s1432_s6 = inlined_call_operand.hbm [shape: f32[1,1], index: 6, kind: output, shape index: {}]  }
   0x1   :  { %v11_v0 = vstv %s1431_s5 }
   0x2   :  { %12 = vst [vmem:[#allocation2] sm:$0x1] %v11_v0 }
   0x3   :  { %13 = vsyncpa [#allocation4], 0 }
   0x4   :  { %14 = vsyncpa [#allocation5], 0  ;;  %s1222_s23 = smov [#allocation3]  }
   0x5   :  { %s24_s24 = sshll.u32 %s1222_s23, 4  ;;  %s25_s24 = int_to_ptr.vmem [resolvable:$true] %s24_s24 }
   0x6   :  { %s1186_s25 = scalar_lea.vmem %s25_s24, 512  ;;  %p1191_p1 = scmp.lt.s32.totalorder %s25_s24, %s25_s24 }
   0x7   :  { %p1187_p0 = scmp.ne.s32.totalorder %s25_s24, %s1186_s25  ;;  %p1192_p2 = scmp.lt.s32.totalorder %s1186_s25, %s1186_s25 }
   0x9   :  { %p1193_p3 = por %p1192_p2, %p1191_p1 }
   0xb   :  { %p1194_p4 = pnand %p1193_p3, %p1187_p0 }
   0xd   :  { %1197 = shalt.err (!%p1194_p4)
}
   0xe   :  { %s1223_s26 = smov 128   ;;  %s1224_s27 = smov 8  }
   0xf   :  { %30 = dma.hbm_to_vmem [thread:$0]  %s1428_s2, 512, %s25_s24, [#allocation4], %s1223_s26, %s1223_s26, %s1224_s27  }
  0x10   :  { %1218 = dma.done.wait [#allocation4], 512  }
  0x11   :  { %1219 = vsyncadd [#allocation4], 4294966784  ;;  %v1225_v1 = vmov 0.0   ;;  %vm1226_vm0 = vmmov 0   ;;  %v1227_v2 = vmov 0   ;;  %v1279_v3 = vld [vmem:[#allocation3 + $0x18] sm:$0xff] }
  0x12   :  { %1015 = vmatprep.subr.mxu0 %v1225_v1  ;;  %1023 = vmatprep.mubr.msk.f32.mxu0 %vm1226_vm0, %v1225_v1  ;;  %v1281_v4 = vld [vmem:[#allocation3 + $0x10] sm:$0xff]  ;;  %v46_v5 = vld [vmem:[%s1426_s0] sm:$0xff]  ;;  %v1289_v6 = vld [vmem:[#allocation3 + $0x8] sm:$0xff]  ;;  %s1228_s9 = smov 64   ;;  %vm68_vm1 = vcmask 261120   ;;  %s1230_s11 = smov 96  }
  0x13   :  { %1113 = vset.pattern.permute.xlu0 %v1227_v2  ;;  %1026 = vmatprep.subr.mxu1 %v1225_v1  ;;  %v1294_v7 = vld [vmem:[#allocation3] sm:$0xff]  ;;  %v956_v8 = vld [vmem:[%s1427_s1] ss:$0 sm:$0xff]  ;;  %s1229_s1 = smov 32   ;;  %vm928_vm2 = vcmask 261127   ;;  %vm939_vm3 = vcmask 7175  }
  0x14   :  { %1034 = vmatprep.mubr.msk.f32.mxu1 %vm1226_vm0, %v1225_v1  ;;  %1016 = vmatpush3.msra.mxu0 %v1279_v3  ;;  %v957_v11 = vld [vmem:[%s1429_s3] ss:$0 sm:$0xff] }
  0x15   :  { %1027 = vmatpush3.msra.mxu1 %v1279_v3  ;;  %1017 = vmatprep.subr.mxu0 %v1225_v1 }
  0x16   :  { %50 = vperm.xlu0 %1113, %v46_v5   ;;  %1018 = vmatpush3.msra.mxu0 %v1281_v4 }
  0x17   :  { %1028 = vmatprep.subr.mxu1 %v1225_v1  ;;  %1019 = vmatprep.subr.mxu0 %v1225_v1 }
  0x18   :  { %1029 = vmatpush3.msra.mxu1 %v1281_v4  ;;  %1020 = vmatpush3.msra.mxu0 %v1289_v6 }
  0x19   :  { %1030 = vmatprep.subr.mxu1 %v1225_v1  ;;  %1021 = vmatprep.subr.mxu0 %v1225_v1 }
  0x1a   :  { %1031 = vmatpush3.msra.mxu1 %v1289_v6  ;;  %1022 = vmatpush3.msra.mxu0 %v1294_v7 }
  0x1b   :  { %1032 = vmatprep.subr.mxu1 %v1225_v1  ;;  %1024 = vmatmul.mubr.f32.vlgmr.msra.gmra.mxu0 %v1225_v1 }
  0x1c   :  { %1033 = vmatpush3.msra.mxu1 %v1294_v7  ;;  %1037 = vmatprep.subr.mxu0 %v1225_v1 }
  0x1d   :  { %1045 = vmatprep.mubr.msk.f32.mxu0 %vm1226_vm0, %v1225_v1  ;;  %1038 = vmatpush3.msra.mxu0 %v1279_v3 }
  0x1e   :  { %1048 = vmatprep.subr.mxu1 %v1225_v1  ;;  %1039 = vmatprep.subr.mxu0 %v1225_v1 }
  0x1f   :  { %1040 = vmatpush3.msra.mxu0 %v1281_v4 }
  0x20   :  { %1041 = vmatprep.subr.mxu0 %v1225_v1 }
  0x21   :  { %1042 = vmatpush3.msra.mxu0 %v1289_v6 }
  0x22   :  { %1043 = vmatprep.subr.mxu0 %v1225_v1 }
  0x23   :  { %1044 = vmatpush3.msra.mxu0 %v1294_v7 }
  0x24   :  { %1059 = vmatprep.subr.mxu0 %v1225_v1 }
  0x91   :  { %v51_v9 = vpop.permute.xlu0 %50 }
  0x92   :  { %v59_v10 = vmul.f32 %v956_v8, %v51_v9 }
  0x94   :  { %v1323_v12 = vadd.f32 %v957_v11, %v59_v10 }
  0xdb   :  { %v138_v13 = vpop.f32.mrf.mxu0 }
  0xdc   :  { %v142_v14 = vadd.f32 %v138_v13, %v1323_v12 }
  0xdd   :  { %v1025_v15 = vpop.f32.mrf.mxu0 }
  0xde   :  { %1114 = vtanh.f32 %v142_v14  ;;  %v958_v17 = vmul.f32 -1.442695, %v142_v14 }
  0xe0   :  { %1116 = vpow2.f32 %v958_v17 }
  0xeb   :  { %v1115_v16 = vpop.eup %1114 }
  0xec   :  { %152 = vrot.lane.b32.xlu0 %v1115_v16, %s1228_s9 }
  0xed   :  { %v1117_v18 = vpop.eup %1116 }
  0xee   :  { %v146_v19 = vadd.f32 1.0, %v1117_v18 }
  0xf0   :  { %1118 = vrcp.f32 %v146_v19 }
  0xfd   :  { %v1119_v20 = vpop.eup %1118 }
  0xfe   :  { %v150_v23 = vmul.f32 0.0, %v1119_v20 }
 0x15e   :  { %v153_v21 = vpop.permute.xlu0 %152 }
 0x15f   :  { %v155_v22 = vmul.f32 %v1119_v20, %v153_v21 }
 0x161   :  { %157 = vrot.lane.b32.xlu1 %v155_v22, %s1229_s1 }
 0x1d3   :  { %v158_v24 = vpop.permute.xlu1 %157 }
 0x1d4   :  { %v160_v25 = vadd.f32 %v158_v24, %v150_v23 }
 0x1d6   :  { %1120 = vtanh.f32 %v160_v25  ;;  %v254_v41 = vrot.slane %v160_v25, 7 }
 0x1e3   :  { %v1121_v26 = vpop.eup %1120 }
 0x1e4   :  { %163 = vrot.lane.b32.xlu1 %v1121_v26, %s1228_s9 }
 0x256   :  { %v164_v27 = vpop.permute.xlu1 %163 }
 0x257   :  { %v166_v28 = vmul.f32 %v1119_v20, %v164_v27 }
 0x259   :  { %168 = vrot.lane.b32.xlu0 %v166_v28, %s1229_s1 }
 0x2cb   :  { %v169_v29 = vpop.permute.xlu0 %168 }
 0x2cc   :  { %1035 = vmatmul.mubr.msk.f32.vlgmr.msra.gmra.mxu1 %vm68_vm1, %v169_v29 }
 0x2cd   :  { %1049 = vmatpush3.msra.mxu1 %v1279_v3  ;;  %1056 = vmatprep.mubr.msk.f32.mxu1 %vm1226_vm0, %v1225_v1 }
 0x2ce   :  { %1050 = vmatprep.subr.mxu1 %v1225_v1 }
 0x2cf   :  { %1051 = vmatpush3.msra.mxu1 %v1281_v4 }
 0x2d0   :  { %1052 = vmatprep.subr.mxu1 %v1225_v1 }
 0x2d1   :  { %1053 = vmatpush3.msra.mxu1 %v1289_v6 }
 0x2d2   :  { %1054 = vmatprep.subr.mxu1 %v1225_v1 }
 0x2d3   :  { %1055 = vmatpush3.msra.mxu1 %v1294_v7 }
 0x2d4   :  { %1070 = vmatprep.subr.mxu1 %v1225_v1 }
 0x38c   :  { %v238_v30 = vpop.f32.mrf.mxu1 }
 0x38d   :  { %v243_v31 = vrot.slane %v238_v30, 7 }
 0x38e   :  { %v1036_v32 = vpop.f32.mrf.mxu1 }
 0x38f   :  { %v245_v33 = vadd.f32 %v243_v31, %v1323_v12 }
 0x391   :  { %1122 = vtanh.f32 %v245_v33  ;;  %v960_v35 = vmul.f32 -1.442695, %v245_v33 }
 0x393   :  { %1124 = vpow2.f32 %v960_v35 }
 0x39e   :  { %v1123_v34 = vpop.eup %1122 }
 0x39f   :  { %258 = vrot.lane.b32.xlu1 %v1123_v34, %s1228_s9 }
 0x3a0   :  { %v1125_v36 = vpop.eup %1124 }
 0x3a1   :  { %v249_v37 = vadd.f32 1.0, %v1125_v36 }
 0x3a3   :  { %1126 = vrcp.f32 %v249_v37 }
 0x3b0   :  { %v1127_v38 = vpop.eup %1126 }
 0x3b1   :  { %v256_v42 = vmul.f32 %v1127_v38, %v254_v41 }
 0x411   :  { %v259_v39 = vpop.permute.xlu1 %258 }
 0x412   :  { %v261_v40 = vmul.f32 %v1127_v38, %v259_v39 }
 0x414   :  { %263 = vrot.lane.b32.xlu0 %v261_v40, %s1229_s1 }
 0x486   :  { %v264_v43 = vpop.permute.xlu0 %263 }
 0x487   :  { %v266_v44 = vadd.f32 %v264_v43, %v256_v42 }
 0x489   :  { %1128 = vtanh.f32 %v266_v44  ;;  %v361_v61 = vrot.slane %v266_v44, 7 }
 0x496   :  { %v1129_v45 = vpop.eup %1128 }
 0x497   :  { %269 = vrot.lane.b32.xlu1 %v1129_v45, %s1228_s9 }
 0x509   :  { %v270_v46 = vpop.permute.xlu1 %269 }
 0x50a   :  { %v272_v47 = vmul.f32 %v1127_v38, %v270_v46 }
 0x50c   :  { %v274_v48 = vrot.slane %v272_v47, 1 }
 0x50e   :  { %275 = vrot.lane.b32.xlu0 %v274_v48, %s1229_s1 }
 0x580   :  { %v276_v49 = vpop.permute.xlu0 %275 }
 0x581   :  { %1046 = vmatmul.mubr.msk.f32.vlgmr.msra.gmra.mxu0 %vm68_vm1, %v276_v49 }
 0x582   :  { %1060 = vmatpush3.msra.mxu0 %v1279_v3  ;;  %1067 = vmatprep.mubr.msk.f32.mxu0 %vm1226_vm0, %v1225_v1 }
 0x583   :  { %1061 = vmatprep.subr.mxu0 %v1225_v1 }
 0x584   :  { %1062 = vmatpush3.msra.mxu0 %v1281_v4 }
 0x585   :  { %1063 = vmatprep.subr.mxu0 %v1225_v1 }
 0x586   :  { %1064 = vmatpush3.msra.mxu0 %v1289_v6 }
 0x587   :  { %1065 = vmatprep.subr.mxu0 %v1225_v1 }
 0x588   :  { %1066 = vmatpush3.msra.mxu0 %v1294_v7 }
 0x589   :  { %1081 = vmatprep.subr.mxu0 %v1225_v1 }
 0x641   :  { %v345_v50 = vpop.f32.mrf.mxu0 }
 0x642   :  { %v350_v51 = vrot.slane %v345_v50, 6 }
 0x643   :  { %v1047_v52 = vpop.f32.mrf.mxu0 }
 0x644   :  { %v352_v53 = vadd.f32 %v350_v51, %v1323_v12 }
 0x646   :  { %1130 = vtanh.f32 %v352_v53  ;;  %v962_v55 = vmul.f32 -1.442695, %v352_v53 }
 0x648   :  { %1132 = vpow2.f32 %v962_v55 }
 0x653   :  { %v1131_v54 = vpop.eup %1130 }
 0x654   :  { %365 = vrot.lane.b32.xlu1 %v1131_v54, %s1228_s9 }
 0x655   :  { %v1133_v56 = vpop.eup %1132 }
 0x656   :  { %v356_v57 = vadd.f32 1.0, %v1133_v56 }
 0x658   :  { %1134 = vrcp.f32 %v356_v57 }
 0x665   :  { %v1135_v58 = vpop.eup %1134 }
 0x666   :  { %v363_v62 = vmul.f32 %v1135_v58, %v361_v61 }
 0x6c6   :  { %v366_v59 = vpop.permute.xlu1 %365 }
 0x6c7   :  { %v368_v60 = vmul.f32 %v1135_v58, %v366_v59 }
 0x6c9   :  { %370 = vrot.lane.b32.xlu0 %v368_v60, %s1229_s1 }
 0x73b   :  { %v371_v63 = vpop.permute.xlu0 %370 }
 0x73c   :  { %v373_v0 = vadd.f32 %v371_v63, %v363_v62 }
 0x73e   :  { %1136 = vtanh.f32 %v373_v0  ;;  %v468_v23 = vrot.slane %v373_v0, 7 }
 0x74b   :  { %v1137_v2 = vpop.eup %1136 }
 0x74c   :  { %376 = vrot.lane.b32.xlu1 %v1137_v2, %s1228_s9 }
 0x7be   :  { %v377_v5 = vpop.permute.xlu1 %376 }
 0x7bf   :  { %v379_v8 = vmul.f32 %v1135_v58, %v377_v5 }
 0x7c1   :  { %v381_v9 = vrot.slane %v379_v8, 2 }
 0x7c3   :  { %382 = vrot.lane.b32.xlu0 %v381_v9, %s1229_s1 }
 0x835   :  { %v383_v10 = vpop.permute.xlu0 %382 }
 0x836   :  { %1057 = vmatmul.mubr.msk.f32.vlgmr.msra.gmra.mxu1 %vm68_vm1, %v383_v10 }
 0x837   :  { %1071 = vmatpush3.msra.mxu1 %v1279_v3  ;;  %1078 = vmatprep.mubr.msk.f32.mxu1 %vm1226_vm0, %v1225_v1 }
 0x838   :  { %1072 = vmatprep.subr.mxu1 %v1225_v1 }
 0x839   :  { %1073 = vmatpush3.msra.mxu1 %v1281_v4 }
 0x83a   :  { %1074 = vmatprep.subr.mxu1 %v1225_v1 }
 0x83b   :  { %1075 = vmatpush3.msra.mxu1 %v1289_v6 }
 0x83c   :  { %1076 = vmatprep.subr.mxu1 %v1225_v1 }
 0x83d   :  { %1077 = vmatpush3.msra.mxu1 %v1294_v7 }
 0x83e   :  { %1092 = vmatprep.subr.mxu1 %v1225_v1 }
 0x8f6   :  { %v452_v11 = vpop.f32.mrf.mxu1 }
 0x8f7   :  { %v457_v13 = vrot.slane %v452_v11, 5 }
 0x8f8   :  { %v1058_v14 = vpop.f32.mrf.mxu1 }
 0x8f9   :  { %v459_v15 = vadd.f32 %v457_v13, %v1323_v12 }
 0x8fb   :  { %1138 = vtanh.f32 %v459_v15  ;;  %v964_v17 = vmul.f32 -1.442695, %v459_v15 }
 0x8fd   :  { %1140 = vpow2.f32 %v964_v17 }
 0x908   :  { %v1139_v16 = vpop.eup %1138 }
 0x909   :  { %472 = vrot.lane.b32.xlu1 %v1139_v16, %s1228_s9 }
 0x90a   :  { %v1141_v18 = vpop.eup %1140 }
 0x90b   :  { %v463_v19 = vadd.f32 1.0, %v1141_v18 }
 0x90d   :  { %1142 = vrcp.f32 %v463_v19 }
 0x91a   :  { %v1143_v20 = vpop.eup %1142 }
 0x91b   :  { %v470_v24 = vmul.f32 %v1143_v20, %v468_v23 }
 0x97b   :  { %v473_v21 = vpop.permute.xlu1 %472 }
 0x97c   :  { %v475_v22 = vmul.f32 %v1143_v20, %v473_v21 }
 0x97e   :  { %477 = vrot.lane.b32.xlu0 %v475_v22, %s1229_s1 }
 0x9f0   :  { %v478_v25 = vpop.permute.xlu0 %477 }
 0x9f1   :  { %v480_v26 = vadd.f32 %v478_v25, %v470_v24 }
 0x9f3   :  { %1144 = vtanh.f32 %v480_v26  ;;  %v575_v43 = vrot.slane %v480_v26, 7 }
 0xa00   :  { %v1145_v27 = vpop.eup %1144 }
 0xa01   :  { %483 = vrot.lane.b32.xlu1 %v1145_v27, %s1228_s9 }
 0xa73   :  { %v484_v28 = vpop.permute.xlu1 %483 }
 0xa74   :  { %v486_v29 = vmul.f32 %v1143_v20, %v484_v28 }
 0xa76   :  { %v488_v30 = vrot.slane %v486_v29, 3 }
 0xa78   :  { %489 = vrot.lane.b32.xlu0 %v488_v30, %s1229_s1 }
 0xaea   :  { %v490_v31 = vpop.permute.xlu0 %489 }
 0xaeb   :  { %1068 = vmatmul.mubr.msk.f32.vlgmr.msra.gmra.mxu0 %vm68_vm1, %v490_v31 }
 0xaec   :  { %1082 = vmatpush3.msra.mxu0 %v1279_v3  ;;  %1089 = vmatprep.mubr.msk.f32.mxu0 %vm1226_vm0, %v1225_v1 }
 0xaed   :  { %1083 = vmatprep.subr.mxu0 %v1225_v1 }
 0xaee   :  { %1084 = vmatpush3.msra.mxu0 %v1281_v4 }
 0xaef   :  { %1085 = vmatprep.subr.mxu0 %v1225_v1 }
 0xaf0   :  { %1086 = vmatpush3.msra.mxu0 %v1289_v6 }
 0xaf1   :  { %1087 = vmatprep.subr.mxu0 %v1225_v1 }
 0xaf2   :  { %1088 = vmatpush3.msra.mxu0 %v1294_v7 }
 0xbab   :  { %v559_v32 = vpop.f32.mrf.mxu0 }
 0xbac   :  { %v564_v33 = vrot.slane %v559_v32, 4 }
 0xbad   :  { %v1069_v34 = vpop.f32.mrf.mxu0 }
 0xbae   :  { %v566_v35 = vadd.f32 %v564_v33, %v1323_v12 }
 0xbb0   :  { %1146 = vtanh.f32 %v566_v35  ;;  %v966_v37 = vmul.f32 -1.442695, %v566_v35 }
 0xbb2   :  { %1148 = vpow2.f32 %v966_v37 }
 0xbbd   :  { %v1147_v36 = vpop.eup %1146 }
 0xbbe   :  { %579 = vrot.lane.b32.xlu1 %v1147_v36, %s1228_s9 }
 0xbbf   :  { %v1149_v38 = vpop.eup %1148 }
 0xbc0   :  { %v570_v39 = vadd.f32 1.0, %v1149_v38 }
 0xbc2   :  { %1150 = vrcp.f32 %v570_v39 }
 0xbcf   :  { %v1151_v40 = vpop.eup %1150 }
 0xbd0   :  { %v577_v44 = vmul.f32 %v1151_v40, %v575_v43 }
 0xc30   :  { %v580_v41 = vpop.permute.xlu1 %579 }
 0xc31   :  { %v582_v42 = vmul.f32 %v1151_v40, %v580_v41 }
 0xc33   :  { %584 = vrot.lane.b32.xlu0 %v582_v42, %s1229_s1 }
 0xca5   :  { %v585_v45 = vpop.permute.xlu0 %584 }
 0xca6   :  { %v587_v46 = vadd.f32 %v585_v45, %v577_v44 }
 0xca8   :  { %1152 = vtanh.f32 %v587_v46 }
 0xcb5   :  { %v1153_v47 = vpop.eup %1152 }
 0xcb6   :  { %590 = vrot.lane.b32.xlu1 %v1153_v47, %s1228_s9 }
 0xd28   :  { %v591_v48 = vpop.permute.xlu1 %590 }
 0xd29   :  { %v593_v49 = vmul.f32 %v1151_v40, %v591_v48  ;;  %v973_v40 = vld [vmem:[%s1430_s4] ss:$0 sm:$0xff]  ;;  %s1231_s4 = smov [#allocation6]  }
 0xd2a   :  { %s947_s12 = sshll.u32 %s1231_s4, 4  ;;  %s948_s12 = int_to_ptr.vmem [resolvable:$true] %s947_s12 }
 0xd2b   :  { %v595_v50 = vrot.slane %v593_v49, 4  ;;  %s1198_s13 = scalar_lea.vmem %s948_s12, 16  ;;  %s1202_s14 = scalar_lea.vmem %s948_s12, 32 }
 0xd2c   :  { %p1199_p5 = scmp.ne.s32.totalorder %s948_s12, %s1198_s13  ;;  %p1203_p6 = scmp.lt.s32.totalorder %s948_s12, %s948_s12 }
 0xd2d   :  { %596 = vrot.lane.b32.xlu0 %v595_v50, %s1229_s1  ;;  %p1204_p7 = scmp.lt.s32.totalorder %s1202_s14, %s1198_s13 }
 0xd2f   :  { %p1205_p8 = por %p1204_p7, %p1203_p6 }
 0xd31   :  { %p1206_p9 = pnand %p1205_p8, %p1199_p5 }
 0xd9f   :  { %v597_v51 = vpop.permute.xlu0 %596 }
 0xda0   :  { %1079 = vmatmul.mubr.msk.f32.vlgmr.msra.gmra.mxu1 %vm68_vm1, %v597_v51  ;;  %v974_v51 = vld [vmem:[#allocation2] ss:$0 sm:$0xff] }
 0xda1   :  { %1093 = vmatpush3.msra.mxu1 %v1279_v3  ;;  %1100 = vmatprep.mubr.msk.f32.mxu1 %vm1226_vm0, %v1225_v1 }
 0xda2   :  { %1094 = vmatprep.subr.mxu1 %v1225_v1 }
 0xda3   :  { %1095 = vmatpush3.msra.mxu1 %v1281_v4 }
 0xda4   :  { %1096 = vmatprep.subr.mxu1 %v1225_v1 }
 0xda5   :  { %1097 = vmatpush3.msra.mxu1 %v1289_v6 }
 0xda6   :  { %1098 = vmatprep.subr.mxu1 %v1225_v1  ;;  %v682_v1 = vrot.slane %v587_v46, 7 }
 0xda7   :  { %1099 = vmatpush3.msra.mxu1 %v1294_v7 }
 0xe60   :  { %v666_v52 = vpop.f32.mrf.mxu1 }
 0xe61   :  { %v671_v53 = vrot.slane %v666_v52, 3 }
 0xe62   :  { %v1080_v54 = vpop.f32.mrf.mxu1 }
 0xe63   :  { %v673_v3 = vadd.f32 %v671_v53, %v1323_v12 }
 0xe65   :  { %1154 = vtanh.f32 %v673_v3  ;;  %v968_v56 = vmul.f32 -1.442695, %v673_v3 }
 0xe67   :  { %1156 = vpow2.f32 %v968_v56 }
 0xe72   :  { %v1155_v55 = vpop.eup %1154 }
 0xe73   :  { %686 = vrot.lane.b32.xlu1 %v1155_v55, %s1228_s9 }
 0xe74   :  { %v1157_v4 = vpop.eup %1156 }
 0xe75   :  { %v677_v57 = vadd.f32 1.0, %v1157_v4 }
 0xe77   :  { %1158 = vrcp.f32 %v677_v57 }
 0xe84   :  { %v1159_v58 = vpop.eup %1158 }
 0xe85   :  { %v684_v7 = vmul.f32 %v1159_v58, %v682_v1 }
 0xee5   :  { %v687_v6 = vpop.permute.xlu1 %686 }
 0xee6   :  { %v689_v59 = vmul.f32 %v1159_v58, %v687_v6 }
 0xee8   :  { %691 = vrot.lane.b32.xlu0 %v689_v59, %s1229_s1 }
 0xf5a   :  { %v692_v60 = vpop.permute.xlu0 %691 }
 0xf5b   :  { %v694_v61 = vadd.f32 %v692_v60, %v684_v7 }
 0xf5d   :  { %1160 = vtanh.f32 %v694_v61  ;;  %v789_v20 = vrot.slane %v694_v61, 7 }
 0xf6a   :  { %v1161_v62 = vpop.eup %1160 }
 0xf6b   :  { %697 = vrot.lane.b32.xlu1 %v1161_v62, %s1228_s9 }
 0xfdd   :  { %v698_v63 = vpop.permute.xlu1 %697 }
 0xfde   :  { %v700_v0 = vmul.f32 %v1159_v58, %v698_v63 }
 0xfe0   :  { %v702_v2 = vrot.slane %v700_v0, 5 }
 0xfe2   :  { %703 = vrot.lane.b32.xlu0 %v702_v2, %s1229_s1 }
0x1054   :  { %v704_v5 = vpop.permute.xlu0 %703 }
0x1055   :  { %1090 = vmatmul.mubr.msk.f32.vlgmr.msra.gmra.mxu0 %vm68_vm1, %v704_v5 }
0x1115   :  { %v773_v8 = vpop.f32.mrf.mxu0 }
0x1116   :  { %v778_v9 = vrot.slane %v773_v8, 2 }
0x1117   :  { %v1091_v10 = vpop.f32.mrf.mxu0 }
0x1118   :  { %v780_v11 = vadd.f32 %v778_v9, %v1323_v12 }
0x111a   :  { %1162 = vtanh.f32 %v780_v11  ;;  %v970_v14 = vmul.f32 -1.442695, %v780_v11 }
0x111c   :  { %1164 = vpow2.f32 %v970_v14 }
0x1127   :  { %v1163_v13 = vpop.eup %1162 }
0x1128   :  { %793 = vrot.lane.b32.xlu1 %v1163_v13, %s1228_s9 }
0x1129   :  { %v1165_v15 = vpop.eup %1164 }
0x112a   :  { %v784_v16 = vadd.f32 1.0, %v1165_v15 }
0x112c   :  { %1166 = vrcp.f32 %v784_v16 }
0x1139   :  { %v1167_v17 = vpop.eup %1166 }
0x113a   :  { %v791_v21 = vmul.f32 %v1167_v17, %v789_v20 }
0x119a   :  { %v794_v18 = vpop.permute.xlu1 %793 }
0x119b   :  { %v796_v19 = vmul.f32 %v1167_v17, %v794_v18 }
0x119d   :  { %798 = vrot.lane.b32.xlu0 %v796_v19, %s1229_s1 }
0x120f   :  { %v799_v22 = vpop.permute.xlu0 %798 }
0x1210   :  { %v801_v23 = vadd.f32 %v799_v22, %v791_v21 }
0x1212   :  { %1168 = vtanh.f32 %v801_v23 }
0x121f   :  { %v1169_v24 = vpop.eup %1168 }
0x1220   :  { %804 = vrot.lane.b32.xlu1 %v1169_v24, %s1228_s9 }
0x1292   :  { %v805_v25 = vpop.permute.xlu1 %804 }
0x1293   :  { %v807_v26 = vmul.f32 %v1167_v17, %v805_v25 }
0x1295   :  { %v809_v27 = vrot.slane %v807_v26, 6 }
0x1297   :  { %810 = vrot.lane.b32.xlu0 %v809_v27, %s1229_s1 }
0x1309   :  { %v811_v28 = vpop.permute.xlu0 %810 }
0x130a   :  { %1101 = vmatmul.mubr.msk.f32.vlgmr.msra.gmra.mxu1 %vm68_vm1, %v811_v28 }
0x13ca   :  { %v880_v29 = vpop.f32.mrf.mxu1 }
0x13cb   :  { %v885_v30 = vrot.slane %v880_v29, 1 }
0x13cc   :  { %v1102_v31 = vpop.f32.mrf.mxu1 }
0x13cd   :  { %v887_v32 = vadd.f32 %v885_v30, %v1323_v12  ;;  %v896_v12 = vrot.slane %v801_v23, 7 }
0x13cf   :  { %1170 = vtanh.f32 %v887_v32  ;;  %v972_v34 = vmul.f32 -1.442695, %v887_v32 }
0x13d1   :  { %1172 = vpow2.f32 %v972_v34 }
0x13dc   :  { %v1171_v33 = vpop.eup %1170 }
0x13dd   :  { %900 = vrot.lane.b32.xlu1 %v1171_v33, %s1228_s9 }
0x13de   :  { %v1173_v35 = vpop.eup %1172 }
0x13df   :  { %v891_v36 = vadd.f32 1.0, %v1173_v35 }
0x13e1   :  { %1174 = vrcp.f32 %v891_v36 }
0x13ee   :  { %v1175_v37 = vpop.eup %1174 }
0x13ef   :  { %v898_v41 = vmul.f32 %v1175_v37, %v896_v12 }
0x144f   :  { %v901_v38 = vpop.permute.xlu1 %900 }
0x1450   :  { %v903_v39 = vmul.f32 %v1175_v37, %v901_v38 }
0x1452   :  { %905 = vrot.lane.b32.xlu0 %v903_v39, %s1229_s1 }
0x1456   :  { %920 = vrot.lane.b32.xlu0 %v973_v40, %s1230_s11 }
0x14c4   :  { %v906_v42 = vpop.permute.xlu0 %905 }
0x14c5   :  { %v908_v43 = vadd.f32 %v906_v42, %v898_v41 }
0x14c7   :  { %1176 = vtanh.f32 %v908_v43 }
0x14c8   :  { %v921_v46 = vpop.permute.xlu0 %920 }
0x14d4   :  { %v1177_v44 = vpop.eup %1176 }
0x14d5   :  { %911 = vrot.lane.b32.xlu1 %v1177_v44, %s1228_s9 }
0x1547   :  { %v912_v45 = vpop.permute.xlu1 %911 }
0x1548   :  { %v914_v47 = vmul.f32 %v1175_v37, %v912_v45 }
0x154a   :  { %v923_v48 = vmul.f32 %v921_v46, %v914_v47 }
0x154c   :  { %925 = vrot.lane.b32.xlu1 %v923_v48, %s1229_s1 }
0x15be   :  { %v926_v49 = vpop.permute.xlu1 %925 }
0x15bf   :  { %v929_v50 = vsel %vm928_vm2, %v926_v49, 0.0 }
0x15c0   :  { %930 = vadd.xlane.f32.xlu0 %v929_v50 }
0x1649   :  { %v931_v52 = vpop.xlane.xlu0 %930 }
0x164a   :  { %v938_v53 = vadd.f32 %v974_v51, %v931_v52 }
0x164c   :  { %940 = vst.msk [vmem:[#allocation6 - $0x7] sm:$0x80] %vm939_vm3, %v938_v53 }
0x164d   :  { %1209 = shalt.err (!%p1206_p9)
}
0x164e   :  { %950 = dma.vmem_to_hbm [thread:$0]  %s948_s12, 16, %s1432_s6, [#allocation5]  }
0x164f   :  { %1220 = dma.done.wait [#allocation5], 16  }
0x1650   :  { %1221 = vsyncadd [#allocation5], 4294967280 }
0x1651   :  { %954 = vsyncpa [#allocation4], 1 }
0x1652   :  { %955 = vsyncpa [#allocation5], 1 }

</bundles_post_ra>
